<compile_context>
chip_gen: v5e
topology: v5e:2x2
jax: 0.10.0
libtpu: 0.0.40
codegen_flags: <defaults>
</compile_context>

<pallas_src>
import jax
import jax.numpy as jnp
from jax.experimental import pallas as pl
from jax.experimental.pallas import tpu as pltpu

_N_PAD = 128  # lane-dense padded head width (real head width is 6)


def _head_kernel(h_ref, m_ref, cnt_ref, w_ref, b_ref, o_ref, acc_ref):
    """One (batch, seq-tile) grid step of masked-mean-pool + linear head.

    h_ref:   [S_TILE, H]   hidden-state tile (native dtype, e.g. bf16)
    m_ref:   [1, S_TILE]   attention-mask tile (same dtype as hidden, values 0/1)
    cnt_ref: [1, 1]  f32   valid-token count for this batch row (wrapper-computed)
    w_ref:   [H, 128]      f32 fc weight, transposed + zero-padded to 128 lanes
    b_ref:   [1, 128]      f32 fc bias, zero-padded
    o_ref:   [1, 128]      padded logits for this batch row
    acc_ref: [1, H]  f32   running masked sum over the sequence (scratch)
    """
    s = pl.program_id(1)

    @pl.when(s == 0)
    def _init():
        acc_ref[...] = jnp.zeros_like(acc_ref)

    # Masked sum as a [1, S_TILE] x [S_TILE, H] MXU product (mask is exactly 0/1,
    # so bf16 products equal the bf16 hidden values; accumulation stays f32).
    acc_ref[...] += jnp.dot(m_ref[...], h_ref[...],
                            preferred_element_type=jnp.float32)

    @pl.when(s == pl.num_programs(1) - 1)
    def _finalize():
        # (sum / cnt) @ W == (sum @ W) / cnt  (division commutes with linear map).
        logits = jnp.dot(acc_ref[...], w_ref[...],
                         preferred_element_type=jnp.float32)        # [1, 128]
        inv = 1.0 / jnp.maximum(cnt_ref[...], 1e-9)                 # [1, 1] exact
        o_ref[...] = logits * inv + b_ref[...]


def _chip_budgets():
    """Generation-aware (per-tile byte cap, vmem_limit_bytes)."""
    kind = ""
    try:
        kind = jax.devices()[0].device_kind.lower()
    except Exception:  # pragma: no cover - defensive
        pass
    phys_vmem = 128 << 20
    try:
        phys_vmem = int(pltpu.get_tpu_info().vmem_capacity_bytes)
    except Exception:  # pragma: no cover - fall back to device_kind heuristic
        if "v7" in kind or "7x" in kind:
            phys_vmem = 64 << 20
    if "v5" in kind:
        # v5e: ~820 GB/s HBM, 16 MiB default scoped VMEM -> 4 MiB tiles already
        # hide the ~0.35 us step overhead; raise the scoped limit for headroom.
        return 4 << 20, 32 << 20
    if phys_vmem <= (64 << 20):
        # v7x-class: 3.2 TB/s HBM but only 64 MiB physical VMEM -> big tiles,
        # explicit budget (2x hidden buffers + resident W/b must fit).
        return 10 << 20, 48 << 20
    # v6e-class: ~1.4 TB/s HBM, 128 MiB physical VMEM.
    return 12 << 20, 64 << 20


def _pick_seq_tile(S, H, itemsize, tile_cap, vmem_limit):
    """Largest legal seq tile: divides S, multiple of 128 (or == S), fits budget."""
    # Leave room for 2x hidden buffers + (double-buffered) resident W/b + misc.
    resident = 2 * (H * _N_PAD + _N_PAD) * 4 + (1 << 20)
    cap = min(tile_cap, max((vmem_limit - resident) // 2, 1 << 19))
    if S * H * itemsize <= cap:
        return S
    t = ((cap // (H * itemsize)) // 128) * 128
    while t >= 128:
        if S % t == 0:
            return t
        t -= 128
    raise ValueError(
        f"No legal sequence tile for S={S}, H={H}: need a multiple-of-128 divisor "
        f"of S whose [tile, H] block fits in {cap} bytes. Pad S to a multiple of "
        f"128 or pass seq_tile explicitly.")


def emotion_head(last_hidden, attention_mask, fc_weight, fc_bias, *, seq_tile=None):
    """Masked mean pooling over the sequence + linear head, in Pallas.

    last_hidden:    [B, S, H]  any float dtype (bf16 recommended; kept on the wire)
    attention_mask: [B, S]     any dtype with 0/1 values (like .float() in PyTorch)
    fc_weight:      [6, H]     PyTorch nn.Linear layout
    fc_bias:        [6]
    returns logits: [B, 6]     float32
    """
    B, S, H = last_hidden.shape
    n_out = fc_weight.shape[0]
    tile_cap, vmem_limit = _chip_budgets()

    if seq_tile is None:
        seq_tile = _pick_seq_tile(S, H, last_hidden.dtype.itemsize,
                                  tile_cap, vmem_limit)
    assert S % seq_tile == 0, "seq_tile must divide S"
    assert seq_tile == S or seq_tile % 128 == 0, \
        "seq_tile must be a multiple of 128 (lane-dense MXU LHS) or equal S"
    n_seq_blocks = S // seq_tile

    # Lane-dense mask [B, 1, S] in the hidden dtype (0/1 -> exact in bf16);
    # each tile is the natural [1, S_TILE] MXU LHS.
    m = attention_mask.astype(last_hidden.dtype).reshape(B, 1, S)
    # Valid-token counts computed once in XLA (removes per-tile scratch reduce).
    cnt = jnp.sum(attention_mask.astype(jnp.float32), axis=1).reshape(B, 1, 1)

    # Lane-dense padded head: [H, 128] weight, [1, 128] bias (kept f32 for accuracy).
    w_t = jnp.zeros((H, _N_PAD), jnp.float32).at[:, :n_out].set(
        jnp.transpose(fc_weight).astype(jnp.float32))
    b_pad = jnp.zeros((1, _N_PAD), jnp.float32).at[:, :n_out].set(
        fc_bias.astype(jnp.float32))

    # NOTE: on v7x both TensorCores are used only when B >= 2 (batch axis is
    # "parallel"); for B == 1 a leading size-2 split of the sequence axis with a
    # wrapper-side combine would be needed to keep the second core busy.
    grid_spec = pltpu.PrefetchScalarGridSpec(
        num_scalar_prefetch=0,
        grid=(B, n_seq_blocks),
        in_specs=[
            # hidden tile: [S_TILE, H], pipelined along the seq axis
            pl.BlockSpec((pl.Squeezed(), seq_tile, H), lambda b, s: (b, s, 0)),
            # mask tile: [1, S_TILE] lane-dense MXU LHS
            pl.BlockSpec((pl.Squeezed(), 1, seq_tile), lambda b, s: (b, 0, s)),
            # per-row token count: [1, 1]
            pl.BlockSpec((pl.Squeezed(), 1, 1), lambda b, s: (b, 0, 0)),
            # weights / bias: resident (block index constant across the grid)
            pl.BlockSpec((H, _N_PAD), lambda b, s: (0, 0)),
            pl.BlockSpec((1, _N_PAD), lambda b, s: (0, 0)),
        ],
        out_specs=pl.BlockSpec((pl.Squeezed(), 1, _N_PAD), lambda b, s: (b, 0, 0)),
        scratch_shapes=[
            pltpu.VMEM((1, H), jnp.float32),   # masked-sum accumulator
        ],
    )

    out_padded = pl.pallas_call(
        _head_kernel,
        out_shape=jax.ShapeDtypeStruct((B, 1, _N_PAD), jnp.float32),
        grid_spec=grid_spec,
        compiler_params=pltpu.CompilerParams(
            dimension_semantics=("parallel", "arbitrary"),
            vmem_limit_bytes=int(vmem_limit)),
    )(last_hidden, m, cnt, w_t, b_pad)

    return out_padded[:, 0, :n_out]


def _reference(last_hidden, attention_mask, fc_weight, fc_bias):
    m = attention_mask.astype(jnp.float32)[:, :, None]
    summed = jnp.sum(last_hidden.astype(jnp.float32) * m, axis=1)
    denom = jnp.maximum(jnp.sum(m, axis=1), 1e-9)
    pooled = summed / denom
    return pooled @ fc_weight.T + fc_bias


if __name__ == "__main__":
    # Small shapes that still exercise multi-tile pipelining (2 seq tiles of 128),
    # lane-dense stores, bf16-on-the-wire hidden states and padded rows.
    B, S, H = 2, 256, 64

    key = jax.random.PRNGKey(0)
    k_h, k_w, k_b = jax.random.split(key, 3)

    # Synthetic "last hidden state" standing in for the Llama backbone output,
    # kept in bf16 like a real backbone would emit (no wrapper-side upcast).
    last_hidden = jax.random.normal(k_h, (B, S, H), dtype=jnp.float32).astype(jnp.bfloat16)

    # Attention mask: first example fully valid, second has trailing padding.
    valid = jnp.array([S, 160], jnp.int32)
    pos = jnp.arange(S, dtype=jnp.int32)[None, :]
    attention_mask = (pos < valid[:, None]).astype(jnp.int32)

    # Deterministic fc parameters (nn.Linear(hidden_size, 6) layout: [6, H], [6]).
    fc_weight = jax.random.normal(k_w, (6, H), dtype=jnp.float32) * 0.02
    fc_bias = jax.random.normal(k_b, (6,), dtype=jnp.float32) * 0.01

    logits = emotion_head(last_hidden, attention_mask, fc_weight, fc_bias,
                          seq_tile=128)
    logits = jax.block_until_ready(logits)

    ref = _reference(last_hidden, attention_mask, fc_weight, fc_bias)
    assert logits.shape == (B, 6)
    assert jnp.allclose(logits, ref, atol=1e-4, rtol=1e-4), (logits, ref)

    print("KERNEL_OK")
</pallas_src>

<mosaic_0001>
module attributes {stable_mosaic.version = 11 : i64} {
  func.func @_head_kernel(%arg0: i32, %arg1: i32, %arg2: memref<1x128x64xbf16, #tpu.memory_space<vmem>>, %arg3: memref<1x1x128xbf16, #tpu.memory_space<vmem>>, %arg4: memref<1x1x1xf32, #tpu.memory_space<vmem>>, %arg5: memref<64x128xf32, #tpu.memory_space<vmem>>, %arg6: memref<1x128xf32, #tpu.memory_space<vmem>>, %arg7: memref<1x1x128xf32, #tpu.memory_space<vmem>>, %arg8: memref<1x64xf32, #tpu.memory_space<vmem>>) attributes {dimension_semantics = [#tpu.dimension_semantics<parallel>, #tpu.dimension_semantics<arbitrary>], iteration_bounds = array<i64: 2, 2>, scalar_prefetch = 0 : i64, scratch_operands = 1 : i64, tpu.core_type = #tpu.core_type<tc>, window_params = [{transform_indices = @transform_0, window_bounds = array<i64: 1, 128, 64>}, {transform_indices = @transform_1, window_bounds = array<i64: 1, 1, 128>}, {transform_indices = @transform_2, window_bounds = array<i64: 1, 1, 1>}, {pipeline_mode = #tpu.pipeline_mode<synchronous>, transform_indices = @transform_3, window_bounds = array<i64: 64, 128>}, {pipeline_mode = #tpu.pipeline_mode<synchronous>, transform_indices = @transform_4, window_bounds = array<i64: 1, 128>}, {transform_indices = @transform_5, window_bounds = array<i64: 1, 1, 128>}]} {
    %c0_i32 = arith.constant 0 : i32
    %0 = arith.cmpi eq, %arg1, %c0_i32 : i32
    %1 = arith.extui %0 : i1 to i32
    %c0_i32_0 = arith.constant 0 : i32
    %2 = arith.cmpi ne, %1, %c0_i32_0 : i32
    scf.if %2 {
      %cst_11 = arith.constant 0.000000e+00 : f32
      %14 = vector.broadcast %cst_11 : f32 to vector<1x64xf32>
      %c0_12 = arith.constant 0 : index
      %c0_13 = arith.constant 0 : index
      %15 = vector.load %arg8[%c0_12, %c0_13] : memref<1x64xf32, #tpu.memory_space<vmem>>, vector<1x64xf32>
      tpu.vector_store %arg8[%c0_12, %c0_13], %14 {strides = array<i32>} : memref<1x64xf32, #tpu.memory_space<vmem>>, vector<1x64xf32>,
    } else {
    }
    %c0 = arith.constant 0 : index
    %c0_1 = arith.constant 0 : index
    %3 = vector.load %arg8[%c0, %c0_1] : memref<1x64xf32, #tpu.memory_space<vmem>>, vector<1x64xf32>
    %c0_2 = arith.constant 0 : index
    %c0_3 = arith.constant 0 : index
    %c0_4 = arith.constant 0 : index
    %4 = vector.load %arg3[%c0_2, %c0_3, %c0_4] : memref<1x1x128xbf16, #tpu.memory_space<vmem>>, vector<1x1x128xbf16>
    %5 = vector.shape_cast %4 : vector<1x1x128xbf16> to vector<1x128xbf16>
    %c0_5 = arith.constant 0 : index
    %c0_6 = arith.constant 0 : index
    %c0_7 = arith.constant 0 : index
    %6 = vector.load %arg2[%c0_5, %c0_6, %c0_7] : memref<1x128x64xbf16, #tpu.memory_space<vmem>>, vector<1x128x64xbf16>
    %7 = vector.shape_cast %6 : vector<1x128x64xbf16> to vector<128x64xbf16>
    %cst = arith.constant dense<0.000000e+00> : vector<1x64xf32>
    %8 = tpu.matmul %5, %7, %cst {dimension_numbers = #tpu.dot_dimension_numbers<[1], [0], [0], [1], [0, 0, 1, 1], [], []>} : vector<1x128xbf16>, vector<128x64xbf16>, vector<1x64xf32> -> vector<1x64xf32>
    %9 = arith.addf %3, %8 : vector<1x64xf32>
    %c0_8 = arith.constant 0 : index
    %c0_9 = arith.constant 0 : index
    %10 = vector.load %arg8[%c0_8, %c0_9] : memref<1x64xf32, #tpu.memory_space<vmem>>, vector<1x64xf32>
    tpu.vector_store %arg8[%c0_8, %c0_9], %9 {strides = array<i32>} : memref<1x64xf32, #tpu.memory_space<vmem>>, vector<1x64xf32>,
    %c1_i32 = arith.constant 1 : i32
    %11 = arith.cmpi eq, %arg1, %c1_i32 : i32
    %12 = arith.extui %11 : i1 to i32
    %c0_i32_10 = arith.constant 0 : i32
    %13 = arith.cmpi ne, %12, %c0_i32_10 : i32
    scf.if %13 {
      %c0_11 = arith.constant 0 : index
      %c0_12 = arith.constant 0 : index
      %14 = vector.load %arg8[%c0_11, %c0_12] : memref<1x64xf32, #tpu.memory_space<vmem>>, vector<1x64xf32>
      %c0_13 = arith.constant 0 : index
      %c0_14 = arith.constant 0 : index
      %15 = vector.load %arg5[%c0_13, %c0_14] : memref<64x128xf32, #tpu.memory_space<vmem>>, vector<64x128xf32>
      %cst_15 = arith.constant dense<0.000000e+00> : vector<1x128xf32>
      %16 = tpu.matmul %14, %15, %cst_15 {dimension_numbers = #tpu.dot_dimension_numbers<[1], [0], [0], [1], [0, 0, 1, 1], [], []>} : vector<1x64xf32>, vector<64x128xf32>, vector<1x128xf32> -> vector<1x128xf32>
      %c0_16 = arith.constant 0 : index
      %c0_17 = arith.constant 0 : index
      %c0_18 = arith.constant 0 : index
      %17 = vector.load %arg4[%c0_16, %c0_17, %c0_18] : memref<1x1x1xf32, #tpu.memory_space<vmem>>, vector<1x1x1xf32>
      %18 = vector.shape_cast %17 : vector<1x1x1xf32> to vector<1x1xf32>
      %cst_19 = arith.constant 9.99999971E-10 : f32
      %19 = vector.broadcast %cst_19 : f32 to vector<1x1xf32>
      %20 = arith.maximumf %18, %19 : vector<1x1xf32>
      %cst_20 = arith.constant 1.000000e+00 : f32
      %21 = vector.broadcast %cst_20 : f32 to vector<1x1xf32>
      %22 = arith.divf %21, %20 : vector<1x1xf32>
      %23 = vector.broadcast %22 : vector<1x1xf32> to vector<1x128xf32>
      %24 = arith.mulf %16, %23 : vector<1x128xf32>
      %c0_21 = arith.constant 0 : index
      %c0_22 = arith.constant 0 : index
      %25 = vector.load %arg6[%c0_21, %c0_22] : memref<1x128xf32, #tpu.memory_space<vmem>>, vector<1x128xf32>
      %26 = arith.addf %24, %25 : vector<1x128xf32>
      %c0_23 = arith.constant 0 : index
      %c0_24 = arith.constant 0 : index
      %c0_25 = arith.constant 0 : index
      %27 = vector.load %arg7[%c0_23, %c0_24, %c0_25] : memref<1x1x128xf32, #tpu.memory_space<vmem>>, vector<1x1x128xf32>
      %28 = vector.shape_cast %27 : vector<1x1x128xf32> to vector<1x128xf32>
      %29 = vector.shape_cast %26 : vector<1x128xf32> to vector<1x1x128xf32>
      tpu.vector_store %arg7[%c0_23, %c0_24, %c0_25], %29 {strides = array<i32>} : memref<1x1x128xf32, #tpu.memory_space<vmem>>, vector<1x1x128xf32>,
    } else {
    }
    return
  }
  func.func @transform_0(%arg0: i32, %arg1: i32) -> (i32, i32, i32) {
    %c0_i32 = arith.constant 0 : i32
    %c0_i32_0 = arith.constant 0 : i32
    return %arg0, %arg1, %c0_i32 : i32, i32, i32
  }
  func.func @transform_1(%arg0: i32, %arg1: i32) -> (i32, i32, i32) {
    %c0_i32 = arith.constant 0 : i32
    %c0_i32_0 = arith.constant 0 : i32
    return %arg0, %c0_i32, %arg1 : i32, i32, i32
  }
  func.func @transform_2(%arg0: i32, %arg1: i32) -> (i32, i32, i32) {
    %c0_i32 = arith.constant 0 : i32
    %c0_i32_0 = arith.constant 0 : i32
    %c0_i32_1 = arith.constant 0 : i32
    return %arg0, %c0_i32, %c0_i32_0 : i32, i32, i32
  }
  func.func @transform_3(%arg0: i32, %arg1: i32) -> (i32, i32) {
    %c0_i32 = arith.constant 0 : i32
    %c0_i32_0 = arith.constant 0 : i32
    %c0_i32_1 = arith.constant 0 : i32
    return %c0_i32, %c0_i32_0 : i32, i32
  }
  func.func @transform_4(%arg0: i32, %arg1: i32) -> (i32, i32) {
    %c0_i32 = arith.constant 0 : i32
    %c0_i32_0 = arith.constant 0 : i32
    %c0_i32_1 = arith.constant 0 : i32
    return %c0_i32, %c0_i32_0 : i32, i32
  }
  func.func @transform_5(%arg0: i32, %arg1: i32) -> (i32, i32, i32) {
    %c0_i32 = arith.constant 0 : i32
    %c0_i32_0 = arith.constant 0 : i32
    %c0_i32_1 = arith.constant 0 : i32
    return %arg0, %c0_i32, %c0_i32_0 : i32, i32, i32
  }
}

</mosaic_0001>

<bundles_post_ra>
// kernel: tpu_custom_call.1
= control target key start
LH: loop header
LB: loop body
LE: loop exit
PB: predicated region body
PF: predicated region fallthrough
CT: control target
= control target key end

     0   :  { %10 = vsyncpa [#allocation4], 0  ;;  %s984_s0 = inlined_call_operand.vmem [shape: bf16[2,256,64], index: 0, kind: input, shape index: {}]   ;;  %s985_s1 = inlined_call_operand.vmem [shape: bf16[2,1,256], index: 1, kind: input, shape index: {}]   ;;  %s986_s2 = inlined_call_operand.vmem [shape: f32[2,1,1], index: 2, kind: input, shape index: {}]   ;;  %s987_s3 = inlined_call_operand.vmem [shape: f32[64,128], index: 3, kind: input, shape index: {}]   ;;  %s988_s4 = inlined_call_operand.vmem [shape: f32[1,128], index: 4, kind: input, shape index: {}]   ;;  %s989_s5 = inlined_call_operand.hbm [shape: f32[2,1,128], index: 5, kind: output, shape index: {}]  }
   0x1   :  { %12 = vsyncpa [#allocation4 + $0x1], 0  ;;  %s811_s18 = smov 0   ;;  %s813_s19 = smov 0  }
   0x2   :  { %s815_s20 = smov 0   ;;  %s817_s21 = smov 0  }
   0x3   :  { %s819_s22 = smov 0   ;;  %s821_s23 = smov 0  }
   0x4   :  { %s823_s24 = smov 0   ;;  %s825_s25 = smov 0  }
   0x5 LB: > { %995 = sst [smem:[#allocation6_spill]] %s757_s20  ;;  %s553_s26 = sadd.s32 4294967295, %s777_s25   ;;  %s777_s25 = sphi %s825_s25, %s18_s25   ;;  %s773_s24 = sphi %s823_s24, %s1012_s24   ;;  %s769_s23 = sphi %s821_s23, %s1011_s23   ;;  %s765_s22 = sphi %s819_s22, %s1010_s22   ;;  %s761_s21 = sphi %s817_s21, %s1009_s21   ;;  %s757_s20 = sphi %s815_s20, %s1008_s20   ;;  %s753_s19 = sphi %s813_s19, %s1014_s19   ;;  %s749_s18 = sphi %s811_s18, %s1013_s18  }
   0x6   : > { %996 = sst [smem:[#allocation7_spill]] %s769_s23  ;;  %s554_s27 = sadd.s32 4294967294, %s777_s25  }
   0x7   : > { %997 = sst [smem:[#allocation8_spill]] %s773_s24  ;;  %s27_s28 = sadd.s32 1, %s769_s23 }
   0x8   : > { %p28_p0 = scmp.ge.s32.totalorder %s27_s28, 2  ;;  %s30_s29 = sadd.s32 1, %s773_s24 }
   0x9   : > { %p171_p1 = scmp.ne.s32.totalorder %s757_s20, %s753_s19  ;;  %p172_p2 = scmp.eq.s32.totalorder %s553_s26, 3 }
   0xa   : > { %s1016_s28 = smov (%p28_p0, %s27_s28), 0  ;;  %s1018_s29 = smov (!%p28_p0, %s30_s29), %s773_s24 }
   0xb   : > { %998 = sst [smem:[#allocation9_spill]] %s1016_s28  ;;  %p860_p3 = por %p172_p2, %p171_p1 }
   0xc   : > { %p177_p4 = scmp.ne.s32.totalorder %s753_s19, %s749_s18  ;;  %p32_p5 = scmp.ge.s32.totalorder %s1018_s29, 2 }
   0xd   : > { %p178_p6 = scmp.eq.s32.totalorder %s554_s27, 3  ;;  %p557_p7 = scmp.ge.s32.totalorder %s777_s25, 1 }
   0xe   : > { %p231_p8 = scmp.lt.s32.totalorder %s777_s25, 5  ;;  %s1020_s29 = smov (%p32_p5, %s1018_s29), 0 }
   0xf   : > { %1000 = sst [smem:[#allocation10_spill]] %s1020_s29  ;;  %p870_p9 = por %p178_p6, %p177_p4 }
  0x10   : > { %p232_p10 = pnand %p557_p7, %p231_p8  ;;  %s158_s7 = ssub.s32 %s773_s24, %s1020_s29 }
  0x11   : > { %s1001_s6 = scalar_select %p870_p9, 1, 0 }
  0x12   : > { %s161_s8 = sadd.s32 1, %s757_s20  ;;  %p159_p11 = scmp.eq.s32.totalorder %s158_s7, 0 }
  0x13   : > { %1002 = sst [smem:[#allocation11_spill]] %s1001_s6  ;;  %235 = sbr.rel (%p232_p10) target bundleno = 365 (0x16d), region = 40 }
  0x14   : > { %s878_s9 = scalar_select %p159_p11, %s757_s20, %s161_s8  }
  0x15   : > { %s558_s11 = sshll.u32 (!%p232_p10), %s761_s21, 4  ;;  %p273_p12 = scmp.lt.s32.totalorder (!%p232_p10), %s765_s22, 1 }
  0x16   : > { %1003 = sst [smem:[#allocation12_spill]] %s878_s9  ;;  %p275_p13 = scmp.lt.s32.totalorder (!%p232_p10), %s558_s11, 31 }
  0x17   : > { %p284_p0 = scmp.lt.s32.totalorder (!%p232_p10), %s761_s21, 1  ;;  %s1004_s20 = sand.u32 (!%p232_p10), 1, %s753_s19  }
  0x18   : > { %s884_s12 = scalar_select %p273_p12, %s765_s22, 1 }
  0x19   : > { %s1022_s11 = smov (!%p275_p13, %s558_s11), 31  ;;  %s902_s6 = scalar_lea.vmem [#allocation3], %s1004_s20 }
  0x1a   : > { %s559_s13 = sshll.u32 %s884_s12, 5  ;;  %s291_s17 = scalar_lea.vmem %s986_s2, %s884_s12 }
  0x1b   : > { %s278_s14 = sadd.s32 %s559_s13, %s1022_s11  ;;  %s561_s10 = sshll.u32 %s884_s12, 1 }
  0x1c   : > { %s560_s26 = sshll.u32 %s278_s14, 2  ;;  %p562_p1 = scmp.ne.s32.totalorder %s761_s21, 0 }
  0x1d   : > { %s280_s8 = scalar_lea.vmem %s984_s0, %s560_s26 }
  0x1e   : > { %s285_s29 = scalar_select %p284_p0, %s761_s21, 1 }
  0x1f   : > { %295 = sbr.rel (%p562_p1) target bundleno = 38 (0x26), region = 44 }
  0x20   : > { %s287_s28 = sadd.s32 %s561_s10, %s285_s29 }
  0x21   : > { %s288_s9 = scalar_lea.vmem %s985_s1, %s287_s28 }
  0x24   : > { %vm296_vm0 = vcmask 516096   ;;  %v779_v0 = vmov 0.0  }
  0x25   : > { %297 = vst.msk [vmem:[#allocation2] sm:$0x1] %vm296_vm0, %v779_v0 }
  0x26 PF: > { %v606_v1 = vld [vmem:[%s280_s8 + $0x38] sm:$0xff]  ;;  %v605_v2 = vld [vmem:[%s280_s8 + $0x30] sm:$0xff]  ;;  %v604_v3 = vld [vmem:[%s280_s8 + $0x28] sm:$0xff]  ;;  %vm378_vm1 = vcmask 516096   ;;  %p595_p2 = scmp.ne.s32.totalorder %s761_s21, 1 }
  0x27   : > { %364 = vmatpush.bf16.msra.mxu0 %v606_v1  ;;  %v603_v4 = vld [vmem:[%s280_s8 + $0x20] sm:$0xff]  ;;  %v602_v5 = vld [vmem:[%s280_s8 + $0x18] sm:$0xff]  ;;  %v601_v6 = vld [vmem:[%s280_s8 + $0x10] sm:$0xff] }
  0x28   : > { %v600_v7 = vld [vmem:[%s280_s8 + $0x8] sm:$0xff]  ;;  %v599_v8 = vld [vmem:[%s280_s8] sm:$0xff] }
  0x29   : > { %v299_v9 = vld [vmem:[%s288_s9] sm:$0x1] }
  0x2b   : > { %365 = vmatpush.bf16.msra.mxu0 %v605_v2 }
  0x2c   : > { %v298_v10 = vld [vmem:[#allocation2] sm:$0x1] }
  0x2f   : > { %366 = vmatpush.bf16.msra.mxu0 %v604_v3 }
  0x33   : > { %367 = vmatpush.bf16.msra.mxu0 %v603_v4 }
  0x37   : > { %368 = vmatpush.bf16.msra.mxu0 %v602_v5 }
  0x3b   : > { %369 = vmatpush.bf16.msra.mxu0 %v601_v6 }
  0x3f   : > { %370 = vmatpush.bf16.msra.mxu0 %v600_v7 }
  0x43   : > { %371 = vmatpush.bf16.msra.mxu0 %v599_v8 }
  0x46   : > { %372 = vmatmul.bf16.vlgmr.msra.gmra.mxu0 %v299_v9 }
  0xc3   : > { %v373_v11 = vpop.f32.mrf.mxu0 }
  0xc4   : > { %v377_v12 = vadd.f32 %v373_v11, %v298_v10 }
  0xc6   : > { %379 = vst.msk [vmem:[#allocation2] sm:$0x1] %vm378_vm1, %v377_v12 }
  0xc7   : > { %383 = sbr.rel (%p595_p2) target bundleno = 351 (0x15f), region = 48 }
  0xcb   : > { %v375_v13 = vpop.f32.mrf.mxu0 }
  0xcc   : > { %v392_v14 = vld [vmem:[%s987_s3 + $0x38] sm:$0xff]  ;;  %v391_v15 = vld [vmem:[%s987_s3 + $0x30] sm:$0xff]  ;;  %v780_v16 = vmov 0   ;;  %v390_v17 = vld [vmem:[%s987_s3 + $0x28] sm:$0xff]  ;;  %vm393_vm2 = vcmask 523264  }
  0xcd   : > { %405 = vmatpush.msra.mxu0 %v392_v14  ;;  %680 = vset.pattern.permute.xlu0 %v780_v16  ;;  %v417_v18 = vld [vmem:[%s291_s17] sm:$0x1]  ;;  %v388_v21 = vld [vmem:[%s987_s3 + $0x18] sm:$0xff]  ;;  %v387_v22 = vld [vmem:[%s987_s3 + $0x10] sm:$0xff] }
  0xce   : > { %v389_v19 = vld [vmem:[%s987_s3 + $0x20] sm:$0xff]  ;;  %v418_v20 = vmax.f32 %v417_v18, 1e-09  ;;  %v386_v23 = vld [vmem:[%s987_s3 + $0x8] sm:$0xff] }
  0xcf   : > { %406 = vmatpush.msra.mxu0 %v391_v15  ;;  %v385_v25 = vld [vmem:[%s987_s3] sm:$0xff] }
  0xd0   : > { %681 = vrcp.f32 %v418_v20  ;;  %v384_v26 = vld [vmem:[#allocation2] sm:$0x1]  ;;  %v430_v28 = vand.u32 2147483648, %v418_v20  ;;  %vm424_vm3 = vweird.f32 %v418_v20  ;;  %v428_v30 = vand.u32 2147483647, %v418_v20 }
  0xd1   : > { %407 = vmatpush.msra.mxu0 %v390_v17  ;;  %v441_v39 = vld [vmem:[%s988_s4] sm:$0x1] }
  0xd2   : > { %v431_v32 = vor.u32 1.1754944e-38, %v430_v28  ;;  %vm429_vm6 = vcmp.eq.f32.partialorder %v428_v30, 8.507059e+37 }
  0xd3   : > { %408 = vmatpush.msra.mxu0 %v389_v19 }
  0xd5   : > { %409 = vmatpush.msra.mxu0 %v388_v21 }
  0xd6   : > { %v682_v24 = vpop.eup %681 }
  0xd7   : > { %410 = vmatpush.msra.mxu0 %v387_v22  ;;  %v420_v27 = vmul.f32 %v682_v24, %v418_v20  ;;  %vm425_vm4 = vweird.f32 %v682_v24 }
  0xd8   : > { %vm426_vm5 = vmor %vm424_vm3, %vm425_vm4 }
  0xd9   : > { %411 = vmatpush.msra.mxu0 %v386_v23  ;;  %v421_v29 = vsub.f32 1.0, %v420_v27 }
  0xdb   : > { %412 = vmatpush.msra.mxu0 %v385_v25  ;;  %v422_v31 = vmul.f32 %v682_v24, %v421_v29 }
  0xdc   : > { %596 = vmatmul.msk.f32.vlgmr.msra.gmra.mxu0 %vm393_vm2, %v384_v26 }
  0xdd   : > { %v423_v33 = vadd.f32 %v682_v24, %v422_v31 }
  0xdf   : > { %v427_v34 = vsel %vm426_vm5, %v682_v24, %v423_v33 }
  0xe0   : > { %v432_v35 = vsel %vm429_vm6, %v431_v32, %v427_v34 }
  0xe1   : > { %436 = vperm.xlu0 %680, %v432_v35  }
 0x153   : > { %v437_v36 = vpop.permute.xlu0 %436 }
 0x154   : > { %v439_v37 = vperm.slane %v437_v36, 0 }
 0x159   : > { %v414_v38 = vpop.f32.mrf.mxu0 }
 0x15a   : > { %v440_v40 = vmul.f32 %v439_v37, %v414_v38 }
 0x15c   : > { %v442_v41 = vadd.f32 %v441_v39, %v440_v40 }
 0x15e   : > { %443 = vst [vmem:[%s902_s6] sm:$0x1] %v442_v41 }
 0x15f PF: > { %s453_s28 = scalar_lea.hbm %s989_s5, %s765_s22  ;;  %s455_s29 = sshll.u32 %s902_s6, 4  ;;  %s456_s29 = int_to_ptr.vmem [resolvable:$true] %s455_s29 }
 0x160   : > { %s457_s9 = sshll.u32 %s453_s28, 4  ;;  %s1005_s10 = sand.u32 1, %s753_s19   ;;  %s458_s9 = int_to_ptr.hbm [resolvable:$true] %s457_s9 }
 0x161   : > { %s445_s21 = scalar_lea.sflag [#allocation4], %s1005_s10  ;;  %s697_s11 = sshra.s32 %s458_s9, 4  ;;  %s698_s11 = int_to_ptr.hbm [resolvable:$true] %s697_s11 }
 0x162   : > { %s699_s13 = scalar_lea.hbm %s698_s11, 1  ;;  %s703_s16 = scalar_lea.hbm %s989_s5, 2 }
 0x163   : > { %p700_p4 = scmp.ne.s32.totalorder %s698_s11, %s699_s13  ;;  %p704_p7 = scmp.lt.s32.totalorder %s698_s11, %s989_s5 }
 0x164   : > { %p705_p8 = scmp.lt.s32.totalorder %s703_s16, %s699_s13 }
 0x165   : > { %p701_p5 = pnand %p700_p4, %p860_p3 }
 0x166   : > { %p706_p10 = por %p705_p8, %p704_p7 }
 0x167   : > { %p702_p6 = pneg %p701_p5 }
 0x169   : > { %p707_p11 = pnand %p706_p10, %p702_p6 }
 0x16b   : > { %710 = shalt.err (!%p707_p11)
}
 0x16c   : > { %607 = dma.vmem_to_hbm [thread:$0]  (%p860_p3), %s456_s29, 16, %s458_s9, %s445_s21  }
 0x16d PF: > { %p613_p12 = scmp.ge.s32.totalorder %s777_s25, 2  ;;  %s469_s6 = sand.u32 1, %s749_s18  }
 0x16e   : > { %s470_s12 = scalar_lea.sflag [#allocation4], %s469_s6 }
 0x16f   : > { %p610_p13 = pnand %p613_p12, %p870_p9 }
 0x171   : > { %p611_p0 = pneg %p610_p13 }
 0x173   : > { %744 = dma.done.wait (%p611_p0), %s470_s12, 16  }
 0x174   : > { %746 = vsyncadd (%p611_p0), %s470_s12, 4294967280  ;;  %s18_s25 = sadd.s32 1, %s777_s25   ;;  %s1007_s17 = sld [smem:[#allocation6_spill]] }
 0x175   : > { %p15_p1 = scmp.ge.s32.totalorder %s18_s25, 6   ;;  %s1008_s20 = sld [smem:[#allocation12_spill]] }
 0x176   : > { %s1009_s21 = sld [smem:[#allocation7_spill]]  ;;  %s1013_s18 = smov %s753_s19 }
 0x177   : > { %s1010_s22 = sld [smem:[#allocation8_spill]]  ;;  %17 = sbr.rel (!%p15_p1) target bundleno = 5 (0x5), region = 89 }
 0x178   : > { %s1011_s23 = sld [smem:[#allocation9_spill]] }
 0x179   : > { %s1012_s24 = sld [smem:[#allocation10_spill]] }
 0x17a   : > { %s1014_s19 = smov %s1007_s17 }
 0x17c   :  { %475 = vsyncpa [#allocation4], 1 }
 0x17d   :  { %477 = vsyncpa [#allocation4 + $0x1], 1 }

</bundles_post_ra>
